<compile_context>
chip_gen: v7x
topology: tpu7x:2x2x1
jax: 0.10.0
libtpu: 0.0.40
codegen_flags: <defaults>
</compile_context>

<pallas_src>
import math

import numpy as np
import jax
import jax.numpy as jnp
from jax import lax
from jax.experimental import pallas as pl
from jax.experimental.pallas import tpu as pltpu

# ----- small config (consistent with GemmaConfig fields used in __init__) -----
BATCH = 2
SEQ = 8
HIDDEN = 32
NUM_HEADS = 4
HEAD_DIM = 8
NUM_KV_HEADS = 2
N_REP = NUM_HEADS // NUM_KV_HEADS          # num_key_value_groups
ROPE_THETA = 10000.0

Q_OUT = NUM_HEADS * HEAD_DIM               # 32
KV_OUT = NUM_KV_HEADS * HEAD_DIM           # 16
SCALE = 1.0 / math.sqrt(HEAD_DIM)

# Column layout of the fused projection output: [q | k | v | rot(q) | rot(k)]
OFF_Q = 0
OFF_K = OFF_Q + Q_OUT                       # 32
OFF_V = OFF_K + KV_OUT                      # 48
OFF_RQ = OFF_V + KV_OUT                     # 64
OFF_RK = OFF_RQ + Q_OUT                     # 96
FUSED_OUT = OFF_RK + KV_OUT                 # 112


# ------------------------------ fused kernel ----------------------------------
def _gemma_attn_kernel(x_ref, w_ref, wo_ref, cs_ref, o_ref):
    # Single grid step: whole (B*S, HIDDEN) problem lives in VMEM.
    x = x_ref[...]                                                    # (B*S, HIDDEN)
    w = w_ref[...]                                                    # (HIDDEN, 112)
    wo = wo_ref[...]                                                  # (Q_OUT, HIDDEN)
    cs = cs_ref[...]                                                  # (B*S, 2*D)

    # One MXU pass: q*scale | k | v | rot(q)*scale | rot(k)
    qkv = jnp.dot(x, w, preferred_element_type=jnp.float32)          # (B*S, 112)

    D = HEAD_DIM
    dn = (((1,), (1,)), ((), ()))          # contract last dims of both -> no .T

    for b in range(BATCH):                 # static unroll; attention is per-batch
        r0 = b * SEQ
        cos_b = cs[r0:r0 + SEQ, :D]                                   # (S, D)
        sin_b = cs[r0:r0 + SEQ, D:]                                   # (S, D)

        # RoPE for kv heads, computed once per kv head (shared across the group).
        k_rot = []
        for g in range(NUM_KV_HEADS):
            kc = OFF_K + g * D
            rkc = OFF_RK + g * D
            k_rot.append(qkv[r0:r0 + SEQ, kc:kc + D] * cos_b
                         + qkv[r0:r0 + SEQ, rkc:rkc + D] * sin_b)     # (S, D)

        acc = jnp.zeros((SEQ, HIDDEN), jnp.float32)
        for h in range(NUM_HEADS):
            qc = OFF_Q + h * D
            rqc = OFF_RQ + h * D
            # scale already folded into the q / rot(q) weight columns
            qh = (qkv[r0:r0 + SEQ, qc:qc + D] * cos_b
                  + qkv[r0:r0 + SEQ, rqc:rqc + D] * sin_b)            # (S, D)
            g = h // N_REP                 # GQA: no repeat_kv materialization
            kh = k_rot[g]
            vc = OFF_V + g * D
            vh = qkv[r0:r0 + SEQ, vc:vc + D]                          # (S, D)

            s = lax.dot_general(qh, kh, dn,
                                preferred_element_type=jnp.float32)   # (S, S)
            s = s - jnp.max(s, axis=-1, keepdims=True)
            p = jnp.exp(s)
            inv_l = pl.reciprocal(jnp.sum(p, axis=-1, keepdims=True), approx=True)
            oh = jnp.dot(p * inv_l, vh,
                         preferred_element_type=jnp.float32)          # (S, D)
            # Accumulate through this head's W_o row-block: no lane concat.
            acc = acc + jnp.dot(oh, wo[h * D:h * D + D, :],
                                preferred_element_type=jnp.float32)   # (S, HIDDEN)

        o_ref[r0:r0 + SEQ, :] = acc.astype(o_ref.dtype)


# ------------------------- host-side weight preparation ------------------------
def _rotate_half_matrix(num_heads, head_dim):
    """Constant (n, n) signed permutation with x @ R == per-head rotate_half(x)."""
    n = num_heads * head_dim
    half = head_dim // 2
    r = np.zeros((n, n), dtype=np.float32)
    for h in range(num_heads):
        b = h * head_dim
        for i in range(half):
            r[b + i + half, b + i] = -1.0     # out col i      <- -x2
            r[b + i, b + i + half] = 1.0      # out col i+half <-  x1
    return jnp.asarray(r)


def prepare_weights(params):
    """One-time prep (NOT in the jitted forward): transpose to (in, out), fuse
    q/k/v, fold rotate_half and 1/sqrt(head_dim) into the weight columns."""
    rot_q = _rotate_half_matrix(NUM_HEADS, HEAD_DIM)                  # (32, 32)
    rot_k = _rotate_half_matrix(NUM_KV_HEADS, HEAD_DIM)               # (16, 16)
    wq_t = params["wq"].T                                             # (HIDDEN, 32)
    wk_t = params["wk"].T                                             # (HIDDEN, 16)
    wv_t = params["wv"].T                                             # (HIDDEN, 16)
    w_fused = jnp.concatenate(
        [wq_t * SCALE, wk_t, wv_t, (wq_t @ rot_q) * SCALE, wk_t @ rot_k],
        axis=1)                                                       # (HIDDEN, 112)
    w_o_t = params["wo"].T                                            # (Q_OUT, HIDDEN)
    return w_fused, w_o_t


def rotary_cos_sin(position_ids, dtype):
    # GemmaRotaryEmbedding: outer(position, inv_freq), emb = cat(freqs, freqs)
    inv_freq = 1.0 / (ROPE_THETA ** (
        jnp.arange(0, HEAD_DIM, 2, dtype=jnp.float32) / HEAD_DIM))
    freqs = position_ids.astype(jnp.float32)[:, :, None] * inv_freq[None, None, :]
    emb = jnp.concatenate([freqs, freqs], axis=-1)          # (B, S, HEAD_DIM)
    return jnp.cos(emb).astype(dtype), jnp.sin(emb).astype(dtype)


# --------------------------------- wrapper -------------------------------------
@jax.jit
def gemma_attention(hidden_states, w_fused, w_o_t, position_ids):
    B, S, H = hidden_states.shape
    x2d = hidden_states.reshape(B * S, H)

    cos, sin = rotary_cos_sin(position_ids, hidden_states.dtype)      # (B, S, D)
    cos_sin = jnp.concatenate([cos, sin], axis=-1).reshape(B * S, 2 * HEAD_DIM)

    full = lambda i: (0, 0)
    out2d = pl.pallas_call(
        _gemma_attn_kernel,
        out_shape=jax.ShapeDtypeStruct((B * S, HIDDEN), hidden_states.dtype),
        grid=(1,),                                   # single step: no per-step overhead
        in_specs=[
            pl.BlockSpec((B * S, HIDDEN), full),     # x (both batches at once)
            pl.BlockSpec((HIDDEN, FUSED_OUT), full), # fused qkv+rot weight
            pl.BlockSpec((Q_OUT, HIDDEN), full),     # w_o
            pl.BlockSpec((B * S, 2 * HEAD_DIM), full),  # packed cos|sin
        ],
        out_specs=pl.BlockSpec((B * S, HIDDEN), full),
        compiler_params=pltpu.CompilerParams(
            dimension_semantics=("arbitrary",)),
    )(x2d, w_fused, w_o_t, cos_sin)
    return out2d.reshape(B, S, HIDDEN)


# --------------------------- pure-JAX reference check --------------------------
def reference(hidden_states, params, position_ids):
    B, S, H = hidden_states.shape
    x2d = hidden_states.reshape(B * S, H)
    q = (x2d @ params["wq"].T).reshape(B, S, NUM_HEADS, HEAD_DIM).transpose(0, 2, 1, 3)
    k = (x2d @ params["wk"].T).reshape(B, S, NUM_KV_HEADS, HEAD_DIM).transpose(0, 2, 1, 3)
    v = (x2d @ params["wv"].T).reshape(B, S, NUM_KV_HEADS, HEAD_DIM).transpose(0, 2, 1, 3)

    cos, sin = rotary_cos_sin(position_ids, hidden_states.dtype)
    cos = cos[:, None]  # unsqueeze_dim=1
    sin = sin[:, None]

    def rot_half(x):
        d = x.shape[-1]
        return jnp.concatenate([-x[..., d // 2:], x[..., : d // 2]], axis=-1)

    q = q * cos + rot_half(q) * sin
    k = k * cos + rot_half(k) * sin

    # repeat_kv
    k = jnp.repeat(k, N_REP, axis=1)
    v = jnp.repeat(v, N_REP, axis=1)

    w = jnp.einsum("bhqd,bhkd->bhqk", q, k) / math.sqrt(HEAD_DIM)
    w = jax.nn.softmax(w.astype(jnp.float32), axis=-1).astype(q.dtype)
    o = jnp.einsum("bhqk,bhkd->bhqd", w, v)
    o = o.transpose(0, 2, 1, 3).reshape(B * S, NUM_HEADS * HEAD_DIM)
    return (o @ params["wo"].T).reshape(B, S, HIDDEN)


# ------------------------------------ main -------------------------------------
if __name__ == "__main__":
    key = jax.random.PRNGKey(0)
    kx, kq, kk, kv, ko = jax.random.split(key, 5)

    hidden_states = jax.random.normal(kx, (BATCH, SEQ, HIDDEN), dtype=jnp.float32)
    params = {
        "wq": 0.02 * jax.random.normal(kq, (Q_OUT, HIDDEN), jnp.float32),
        "wk": 0.02 * jax.random.normal(kk, (KV_OUT, HIDDEN), jnp.float32),
        "wv": 0.02 * jax.random.normal(kv, (KV_OUT, HIDDEN), jnp.float32),
        "wo": 0.02 * jax.random.normal(ko, (HIDDEN, Q_OUT), jnp.float32),
    }
    position_ids = jnp.broadcast_to(
        jnp.arange(SEQ, dtype=jnp.int32)[None, :], (BATCH, SEQ))

    # One-time weight fusion/transpose, hoisted out of the jitted forward.
    w_fused, w_o_t = prepare_weights(params)

    out = jax.block_until_ready(
        gemma_attention(hidden_states, w_fused, w_o_t, position_ids))
    ref = jax.block_until_ready(reference(hidden_states, params, position_ids))

    assert out.shape == (BATCH, SEQ, HIDDEN)
    # tolerance accounts for the EUP approximate reciprocal in the softmax denom
    assert jnp.allclose(out, ref, atol=1e-4, rtol=1e-3), "mismatch vs JAX reference"
    print("KERNEL_OK")
</pallas_src>

<mosaic_0001>
module attributes {stable_mosaic.version = 11 : i64} {
  func.func @_gemma_attn_kernel(%arg0: i32, %arg1: memref<16x32xf32, #tpu.memory_space<vmem>>, %arg2: memref<32x112xf32, #tpu.memory_space<vmem>>, %arg3: memref<32x32xf32, #tpu.memory_space<vmem>>, %arg4: memref<16x16xf32, #tpu.memory_space<vmem>>, %arg5: memref<16x32xf32, #tpu.memory_space<vmem>>) attributes {dimension_semantics = [#tpu.dimension_semantics<arbitrary>], iteration_bounds = array<i64: 1>, scalar_prefetch = 0 : i64, scratch_operands = 0 : i64, tpu.core_type = #tpu.core_type<tc>, window_params = [{pipeline_mode = #tpu.pipeline_mode<synchronous>, transform_indices = @transform_0, window_bounds = array<i64: 16, 32>}, {pipeline_mode = #tpu.pipeline_mode<synchronous>, transform_indices = @transform_1, window_bounds = array<i64: 32, 112>}, {pipeline_mode = #tpu.pipeline_mode<synchronous>, transform_indices = @transform_2, window_bounds = array<i64: 32, 32>}, {pipeline_mode = #tpu.pipeline_mode<synchronous>, transform_indices = @transform_3, window_bounds = array<i64: 16, 16>}, {pipeline_mode = #tpu.pipeline_mode<synchronous>, transform_indices = @transform_4, window_bounds = array<i64: 16, 32>}]} {
    %c0 = arith.constant 0 : index
    %c0_0 = arith.constant 0 : index
    %0 = vector.load %arg1[%c0, %c0_0] : memref<16x32xf32, #tpu.memory_space<vmem>>, vector<16x32xf32>
    %c0_1 = arith.constant 0 : index
    %c0_2 = arith.constant 0 : index
    %1 = vector.load %arg2[%c0_1, %c0_2] : memref<32x112xf32, #tpu.memory_space<vmem>>, vector<32x112xf32>
    %c0_3 = arith.constant 0 : index
    %c0_4 = arith.constant 0 : index
    %2 = vector.load %arg3[%c0_3, %c0_4] : memref<32x32xf32, #tpu.memory_space<vmem>>, vector<32x32xf32>
    %c0_5 = arith.constant 0 : index
    %c0_6 = arith.constant 0 : index
    %3 = vector.load %arg4[%c0_5, %c0_6] : memref<16x16xf32, #tpu.memory_space<vmem>>, vector<16x16xf32>
    %cst = arith.constant dense<0.000000e+00> : vector<16x112xf32>
    %4 = tpu.matmul %0, %1, %cst {dimension_numbers = #tpu.dot_dimension_numbers<[1], [0], [0], [1], [0, 0, 1, 1], [], []>} : vector<16x32xf32>, vector<32x112xf32>, vector<16x112xf32> -> vector<16x112xf32>
    %5 = vector.extract_strided_slice %3 {offsets = [0, 0], sizes = [8, 8], strides = [1, 1]} : vector<16x16xf32> to vector<8x8xf32>
    %6 = vector.extract_strided_slice %3 {offsets = [0, 8], sizes = [8, 8], strides = [1, 1]} : vector<16x16xf32> to vector<8x8xf32>
    %7 = vector.extract_strided_slice %4 {offsets = [0, 32], sizes = [8, 8], strides = [1, 1]} : vector<16x112xf32> to vector<8x8xf32>
    %8 = arith.mulf %7, %5 : vector<8x8xf32>
    %9 = vector.extract_strided_slice %4 {offsets = [0, 96], sizes = [8, 8], strides = [1, 1]} : vector<16x112xf32> to vector<8x8xf32>
    %10 = arith.mulf %9, %6 : vector<8x8xf32>
    %11 = arith.addf %8, %10 : vector<8x8xf32>
    %12 = vector.extract_strided_slice %4 {offsets = [0, 40], sizes = [8, 8], strides = [1, 1]} : vector<16x112xf32> to vector<8x8xf32>
    %13 = arith.mulf %12, %5 : vector<8x8xf32>
    %14 = vector.extract_strided_slice %4 {offsets = [0, 104], sizes = [8, 8], strides = [1, 1]} : vector<16x112xf32> to vector<8x8xf32>
    %15 = arith.mulf %14, %6 : vector<8x8xf32>
    %16 = arith.addf %13, %15 : vector<8x8xf32>
    %cst_7 = arith.constant 0.000000e+00 : f32
    %17 = vector.broadcast %cst_7 : f32 to vector<8x32xf32>
    %18 = vector.extract_strided_slice %4 {offsets = [0, 0], sizes = [8, 8], strides = [1, 1]} : vector<16x112xf32> to vector<8x8xf32>
    %19 = arith.mulf %18, %5 : vector<8x8xf32>
    %20 = vector.extract_strided_slice %4 {offsets = [0, 64], sizes = [8, 8], strides = [1, 1]} : vector<16x112xf32> to vector<8x8xf32>
    %21 = arith.mulf %20, %6 : vector<8x8xf32>
    %22 = arith.addf %19, %21 : vector<8x8xf32>
    %23 = vector.extract_strided_slice %4 {offsets = [0, 48], sizes = [8, 8], strides = [1, 1]} : vector<16x112xf32> to vector<8x8xf32>
    %cst_8 = arith.constant dense<0.000000e+00> : vector<8x8xf32>
    %24 = tpu.matmul %22, %11, %cst_8 {dimension_numbers = #tpu.dot_dimension_numbers<[1], [1], [0], [0], [0, 0, 1, 0], [], []>} : vector<8x8xf32>, vector<8x8xf32>, vector<8x8xf32> -> vector<8x8xf32>
    %cst_9 = arith.constant dense<0xFF800000> : vector<8xf32>
    %25 = vector.multi_reduction <maximumf>, %24, %cst_9 [1] : vector<8x8xf32> to vector<8xf32>
    %26 = vector.shape_cast %25 : vector<8xf32> to vector<8x1xf32>
    %27 = vector.broadcast %26 : vector<8x1xf32> to vector<8x8xf32>
    %28 = arith.subf %24, %27 : vector<8x8xf32>
    %29 = math.exp %28 : vector<8x8xf32>
    %cst_10 = arith.constant dense<0.000000e+00> : vector<8xf32>
    %30 = vector.multi_reduction <add>, %29, %cst_10 [1] : vector<8x8xf32> to vector<8xf32>
    %31 = vector.shape_cast %30 : vector<8xf32> to vector<8x1xf32>
    %32 = tpu.reciprocal %31 {approx = true} : vector<8x1xf32> -> vector<8x1xf32>
    %33 = vector.broadcast %32 : vector<8x1xf32> to vector<8x8xf32>
    %34 = arith.mulf %29, %33 : vector<8x8xf32>
    %cst_11 = arith.constant dense<0.000000e+00> : vector<8x8xf32>
    %35 = tpu.matmul %34, %23, %cst_11 {dimension_numbers = #tpu.dot_dimension_numbers<[1], [0], [0], [1], [0, 0, 1, 1], [], []>} : vector<8x8xf32>, vector<8x8xf32>, vector<8x8xf32> -> vector<8x8xf32>
    %36 = vector.extract_strided_slice %2 {offsets = [0, 0], sizes = [8, 32], strides = [1, 1]} : vector<32x32xf32> to vector<8x32xf32>
    %cst_12 = arith.constant dense<0.000000e+00> : vector<8x32xf32>
    %37 = tpu.matmul %35, %36, %cst_12 {dimension_numbers = #tpu.dot_dimension_numbers<[1], [0], [0], [1], [0, 0, 1, 1], [], []>} : vector<8x8xf32>, vector<8x32xf32>, vector<8x32xf32> -> vector<8x32xf32>
    %38 = arith.addf %17, %37 : vector<8x32xf32>
    %39 = vector.extract_strided_slice %4 {offsets = [0, 8], sizes = [8, 8], strides = [1, 1]} : vector<16x112xf32> to vector<8x8xf32>
    %40 = arith.mulf %39, %5 : vector<8x8xf32>
    %41 = vector.extract_strided_slice %4 {offsets = [0, 72], sizes = [8, 8], strides = [1, 1]} : vector<16x112xf32> to vector<8x8xf32>
    %42 = arith.mulf %41, %6 : vector<8x8xf32>
    %43 = arith.addf %40, %42 : vector<8x8xf32>
    %44 = vector.extract_strided_slice %4 {offsets = [0, 48], sizes = [8, 8], strides = [1, 1]} : vector<16x112xf32> to vector<8x8xf32>
    %cst_13 = arith.constant dense<0.000000e+00> : vector<8x8xf32>
    %45 = tpu.matmul %43, %11, %cst_13 {dimension_numbers = #tpu.dot_dimension_numbers<[1], [1], [0], [0], [0, 0, 1, 0], [], []>} : vector<8x8xf32>, vector<8x8xf32>, vector<8x8xf32> -> vector<8x8xf32>
    %cst_14 = arith.constant dense<0xFF800000> : vector<8xf32>
    %46 = vector.multi_reduction <maximumf>, %45, %cst_14 [1] : vector<8x8xf32> to vector<8xf32>
    %47 = vector.shape_cast %46 : vector<8xf32> to vector<8x1xf32>
    %48 = vector.broadcast %47 : vector<8x1xf32> to vector<8x8xf32>
    %49 = arith.subf %45, %48 : vector<8x8xf32>
    %50 = math.exp %49 : vector<8x8xf32>
    %cst_15 = arith.constant dense<0.000000e+00> : vector<8xf32>
    %51 = vector.multi_reduction <add>, %50, %cst_15 [1] : vector<8x8xf32> to vector<8xf32>
    %52 = vector.shape_cast %51 : vector<8xf32> to vector<8x1xf32>
    %53 = tpu.reciprocal %52 {approx = true} : vector<8x1xf32> -> vector<8x1xf32>
    %54 = vector.broadcast %53 : vector<8x1xf32> to vector<8x8xf32>
    %55 = arith.mulf %50, %54 : vector<8x8xf32>
    %cst_16 = arith.constant dense<0.000000e+00> : vector<8x8xf32>
    %56 = tpu.matmul %55, %44, %cst_16 {dimension_numbers = #tpu.dot_dimension_numbers<[1], [0], [0], [1], [0, 0, 1, 1], [], []>} : vector<8x8xf32>, vector<8x8xf32>, vector<8x8xf32> -> vector<8x8xf32>
    %57 = vector.extract_strided_slice %2 {offsets = [8, 0], sizes = [8, 32], strides = [1, 1]} : vector<32x32xf32> to vector<8x32xf32>
    %cst_17 = arith.constant dense<0.000000e+00> : vector<8x32xf32>
    %58 = tpu.matmul %56, %57, %cst_17 {dimension_numbers = #tpu.dot_dimension_numbers<[1], [0], [0], [1], [0, 0, 1, 1], [], []>} : vector<8x8xf32>, vector<8x32xf32>, vector<8x32xf32> -> vector<8x32xf32>
    %59 = arith.addf %38, %58 : vector<8x32xf32>
    %60 = vector.extract_strided_slice %4 {offsets = [0, 16], sizes = [8, 8], strides = [1, 1]} : vector<16x112xf32> to vector<8x8xf32>
    %61 = arith.mulf %60, %5 : vector<8x8xf32>
    %62 = vector.extract_strided_slice %4 {offsets = [0, 80], sizes = [8, 8], strides = [1, 1]} : vector<16x112xf32> to vector<8x8xf32>
    %63 = arith.mulf %62, %6 : vector<8x8xf32>
    %64 = arith.addf %61, %63 : vector<8x8xf32>
    %65 = vector.extract_strided_slice %4 {offsets = [0, 56], sizes = [8, 8], strides = [1, 1]} : vector<16x112xf32> to vector<8x8xf32>
    %cst_18 = arith.constant dense<0.000000e+00> : vector<8x8xf32>
    %66 = tpu.matmul %64, %16, %cst_18 {dimension_numbers = #tpu.dot_dimension_numbers<[1], [1], [0], [0], [0, 0, 1, 0], [], []>} : vector<8x8xf32>, vector<8x8xf32>, vector<8x8xf32> -> vector<8x8xf32>
    %cst_19 = arith.constant dense<0xFF800000> : vector<8xf32>
    %67 = vector.multi_reduction <maximumf>, %66, %cst_19 [1] : vector<8x8xf32> to vector<8xf32>
    %68 = vector.shape_cast %67 : vector<8xf32> to vector<8x1xf32>
    %69 = vector.broadcast %68 : vector<8x1xf32> to vector<8x8xf32>
    %70 = arith.subf %66, %69 : vector<8x8xf32>
    %71 = math.exp %70 : vector<8x8xf32>
    %cst_20 = arith.constant dense<0.000000e+00> : vector<8xf32>
    %72 = vector.multi_reduction <add>, %71, %cst_20 [1] : vector<8x8xf32> to vector<8xf32>
    %73 = vector.shape_cast %72 : vector<8xf32> to vector<8x1xf32>
    %74 = tpu.reciprocal %73 {approx = true} : vector<8x1xf32> -> vector<8x1xf32>
    %75 = vector.broadcast %74 : vector<8x1xf32> to vector<8x8xf32>
    %76 = arith.mulf %71, %75 : vector<8x8xf32>
    %cst_21 = arith.constant dense<0.000000e+00> : vector<8x8xf32>
    %77 = tpu.matmul %76, %65, %cst_21 {dimension_numbers = #tpu.dot_dimension_numbers<[1], [0], [0], [1], [0, 0, 1, 1], [], []>} : vector<8x8xf32>, vector<8x8xf32>, vector<8x8xf32> -> vector<8x8xf32>
    %78 = vector.extract_strided_slice %2 {offsets = [16, 0], sizes = [8, 32], strides = [1, 1]} : vector<32x32xf32> to vector<8x32xf32>
    %cst_22 = arith.constant dense<0.000000e+00> : vector<8x32xf32>
    %79 = tpu.matmul %77, %78, %cst_22 {dimension_numbers = #tpu.dot_dimension_numbers<[1], [0], [0], [1], [0, 0, 1, 1], [], []>} : vector<8x8xf32>, vector<8x32xf32>, vector<8x32xf32> -> vector<8x32xf32>
    %80 = arith.addf %59, %79 : vector<8x32xf32>
    %81 = vector.extract_strided_slice %4 {offsets = [0, 24], sizes = [8, 8], strides = [1, 1]} : vector<16x112xf32> to vector<8x8xf32>
    %82 = arith.mulf %81, %5 : vector<8x8xf32>
    %83 = vector.extract_strided_slice %4 {offsets = [0, 88], sizes = [8, 8], strides = [1, 1]} : vector<16x112xf32> to vector<8x8xf32>
    %84 = arith.mulf %83, %6 : vector<8x8xf32>
    %85 = arith.addf %82, %84 : vector<8x8xf32>
    %86 = vector.extract_strided_slice %4 {offsets = [0, 56], sizes = [8, 8], strides = [1, 1]} : vector<16x112xf32> to vector<8x8xf32>
    %cst_23 = arith.constant dense<0.000000e+00> : vector<8x8xf32>
    %87 = tpu.matmul %85, %16, %cst_23 {dimension_numbers = #tpu.dot_dimension_numbers<[1], [1], [0], [0], [0, 0, 1, 0], [], []>} : vector<8x8xf32>, vector<8x8xf32>, vector<8x8xf32> -> vector<8x8xf32>
    %cst_24 = arith.constant dense<0xFF800000> : vector<8xf32>
    %88 = vector.multi_reduction <maximumf>, %87, %cst_24 [1] : vector<8x8xf32> to vector<8xf32>
    %89 = vector.shape_cast %88 : vector<8xf32> to vector<8x1xf32>
    %90 = vector.broadcast %89 : vector<8x1xf32> to vector<8x8xf32>
    %91 = arith.subf %87, %90 : vector<8x8xf32>
    %92 = math.exp %91 : vector<8x8xf32>
    %cst_25 = arith.constant dense<0.000000e+00> : vector<8xf32>
    %93 = vector.multi_reduction <add>, %92, %cst_25 [1] : vector<8x8xf32> to vector<8xf32>
    %94 = vector.shape_cast %93 : vector<8xf32> to vector<8x1xf32>
    %95 = tpu.reciprocal %94 {approx = true} : vector<8x1xf32> -> vector<8x1xf32>
    %96 = vector.broadcast %95 : vector<8x1xf32> to vector<8x8xf32>
    %97 = arith.mulf %92, %96 : vector<8x8xf32>
    %cst_26 = arith.constant dense<0.000000e+00> : vector<8x8xf32>
    %98 = tpu.matmul %97, %86, %cst_26 {dimension_numbers = #tpu.dot_dimension_numbers<[1], [0], [0], [1], [0, 0, 1, 1], [], []>} : vector<8x8xf32>, vector<8x8xf32>, vector<8x8xf32> -> vector<8x8xf32>
    %99 = vector.extract_strided_slice %2 {offsets = [24, 0], sizes = [8, 32], strides = [1, 1]} : vector<32x32xf32> to vector<8x32xf32>
    %cst_27 = arith.constant dense<0.000000e+00> : vector<8x32xf32>
    %100 = tpu.matmul %98, %99, %cst_27 {dimension_numbers = #tpu.dot_dimension_numbers<[1], [0], [0], [1], [0, 0, 1, 1], [], []>} : vector<8x8xf32>, vector<8x32xf32>, vector<8x32xf32> -> vector<8x32xf32>
    %101 = arith.addf %80, %100 : vector<8x32xf32>
    %c0_28 = arith.constant 0 : index
    %c0_29 = arith.constant 0 : index
    %102 = vector.load %arg5[%c0_28, %c0_29] : memref<16x32xf32, #tpu.memory_space<vmem>>, vector<8x32xf32>
    tpu.vector_store %arg5[%c0_28, %c0_29], %101 {strides = array<i32>} : memref<16x32xf32, #tpu.memory_space<vmem>>, vector<8x32xf32>,
    %103 = vector.extract_strided_slice %3 {offsets = [8, 0], sizes = [8, 8], strides = [1, 1]} : vector<16x16xf32> to vector<8x8xf32>
    %104 = vector.extract_strided_slice %3 {offsets = [8, 8], sizes = [8, 8], strides = [1, 1]} : vector<16x16xf32> to vector<8x8xf32>
    %105 = vector.extract_strided_slice %4 {offsets = [8, 32], sizes = [8, 8], strides = [1, 1]} : vector<16x112xf32> to vector<8x8xf32>
    %106 = arith.mulf %105, %103 : vector<8x8xf32>
    %107 = vector.extract_strided_slice %4 {offsets = [8, 96], sizes = [8, 8], strides = [1, 1]} : vector<16x112xf32> to vector<8x8xf32>
    %108 = arith.mulf %107, %104 : vector<8x8xf32>
    %109 = arith.addf %106, %108 : vector<8x8xf32>
    %110 = vector.extract_strided_slice %4 {offsets = [8, 40], sizes = [8, 8], strides = [1, 1]} : vector<16x112xf32> to vector<8x8xf32>
    %111 = arith.mulf %110, %103 : vector<8x8xf32>
    %112 = vector.extract_strided_slice %4 {offsets = [8, 104], sizes = [8, 8], strides = [1, 1]} : vector<16x112xf32> to vector<8x8xf32>
    %113 = arith.mulf %112, %104 : vector<8x8xf32>
    %114 = arith.addf %111, %113 : vector<8x8xf32>
    %cst_30 = arith.constant 0.000000e+00 : f32
    %115 = vector.broadcast %cst_30 : f32 to vector<8x32xf32>
    %116 = vector.extract_strided_slice %4 {offsets = [8, 0], sizes = [8, 8], strides = [1, 1]} : vector<16x112xf32> to vector<8x8xf32>
    %117 = arith.mulf %116, %103 : vector<8x8xf32>
    %118 = vector.extract_strided_slice %4 {offsets = [8, 64], sizes = [8, 8], strides = [1, 1]} : vector<16x112xf32> to vector<8x8xf32>
    %119 = arith.mulf %118, %104 : vector<8x8xf32>
    %120 = arith.addf %117, %119 : vector<8x8xf32>
    %121 = vector.extract_strided_slice %4 {offsets = [8, 48], sizes = [8, 8], strides = [1, 1]} : vector<16x112xf32> to vector<8x8xf32>
    %cst_31 = arith.constant dense<0.000000e+00> : vector<8x8xf32>
    %122 = tpu.matmul %120, %109, %cst_31 {dimension_numbers = #tpu.dot_dimension_numbers<[1], [1], [0], [0], [0, 0, 1, 0], [], []>} : vector<8x8xf32>, vector<8x8xf32>, vector<8x8xf32> -> vector<8x8xf32>
    %cst_32 = arith.constant dense<0xFF800000> : vector<8xf32>
    %123 = vector.multi_reduction <maximumf>, %122, %cst_32 [1] : vector<8x8xf32> to vector<8xf32>
    %124 = vector.shape_cast %123 : vector<8xf32> to vector<8x1xf32>
    %125 = vector.broadcast %124 : vector<8x1xf32> to vector<8x8xf32>
    %126 = arith.subf %122, %125 : vector<8x8xf32>
    %127 = math.exp %126 : vector<8x8xf32>
    %cst_33 = arith.constant dense<0.000000e+00> : vector<8xf32>
    %128 = vector.multi_reduction <add>, %127, %cst_33 [1] : vector<8x8xf32> to vector<8xf32>
    %129 = vector.shape_cast %128 : vector<8xf32> to vector<8x1xf32>
    %130 = tpu.reciprocal %129 {approx = true} : vector<8x1xf32> -> vector<8x1xf32>
    %131 = vector.broadcast %130 : vector<8x1xf32> to vector<8x8xf32>
    %132 = arith.mulf %127, %131 : vector<8x8xf32>
    %cst_34 = arith.constant dense<0.000000e+00> : vector<8x8xf32>
    %133 = tpu.matmul %132, %121, %cst_34 {dimension_numbers = #tpu.dot_dimension_numbers<[1], [0], [0], [1], [0, 0, 1, 1], [], []>} : vector<8x8xf32>, vector<8x8xf32>, vector<8x8xf32> -> vector<8x8xf32>
    %134 = vector.extract_strided_slice %2 {offsets = [0, 0], sizes = [8, 32], strides = [1, 1]} : vector<32x32xf32> to vector<8x32xf32>
    %cst_35 = arith.constant dense<0.000000e+00> : vector<8x32xf32>
    %135 = tpu.matmul %133, %134, %cst_35 {dimension_numbers = #tpu.dot_dimension_numbers<[1], [0], [0], [1], [0, 0, 1, 1], [], []>} : vector<8x8xf32>, vector<8x32xf32>, vector<8x32xf32> -> vector<8x32xf32>
    %136 = arith.addf %115, %135 : vector<8x32xf32>
    %137 = vector.extract_strided_slice %4 {offsets = [8, 8], sizes = [8, 8], strides = [1, 1]} : vector<16x112xf32> to vector<8x8xf32>
    %138 = arith.mulf %137, %103 : vector<8x8xf32>
    %139 = vector.extract_strided_slice %4 {offsets = [8, 72], sizes = [8, 8], strides = [1, 1]} : vector<16x112xf32> to vector<8x8xf32>
    %140 = arith.mulf %139, %104 : vector<8x8xf32>
    %141 = arith.addf %138, %140 : vector<8x8xf32>
    %142 = vector.extract_strided_slice %4 {offsets = [8, 48], sizes = [8, 8], strides = [1, 1]} : vector<16x112xf32> to vector<8x8xf32>
    %cst_36 = arith.constant dense<0.000000e+00> : vector<8x8xf32>
    %143 = tpu.matmul %141, %109, %cst_36 {dimension_numbers = #tpu.dot_dimension_numbers<[1], [1], [0], [0], [0, 0, 1, 0], [], []>} : vector<8x8xf32>, vector<8x8xf32>, vector<8x8xf32> -> vector<8x8xf32>
    %cst_37 = arith.constant dense<0xFF800000> : vector<8xf32>
    %144 = vector.multi_reduction <maximumf>, %143, %cst_37 [1] : vector<8x8xf32> to vector<8xf32>
    %145 = vector.shape_cast %144 : vector<8xf32> to vector<8x1xf32>
    %146 = vector.broadcast %145 : vector<8x1xf32> to vector<8x8xf32>
    %147 = arith.subf %143, %146 : vector<8x8xf32>
    %148 = math.exp %147 : vector<8x8xf32>
    %cst_38 = arith.constant dense<0.000000e+00> : vector<8xf32>
    %149 = vector.multi_reduction <add>, %148, %cst_38 [1] : vector<8x8xf32> to vector<8xf32>
    %150 = vector.shape_cast %149 : vector<8xf32> to vector<8x1xf32>
    %151 = tpu.reciprocal %150 {approx = true} : vector<8x1xf32> -> vector<8x1xf32>
    %152 = vector.broadcast %151 : vector<8x1xf32> to vector<8x8xf32>
    %153 = arith.mulf %148, %152 : vector<8x8xf32>
    %cst_39 = arith.constant dense<0.000000e+00> : vector<8x8xf32>
    %154 = tpu.matmul %153, %142, %cst_39 {dimension_numbers = #tpu.dot_dimension_numbers<[1], [0], [0], [1], [0, 0, 1, 1], [], []>} : vector<8x8xf32>, vector<8x8xf32>, vector<8x8xf32> -> vector<8x8xf32>
    %155 = vector.extract_strided_slice %2 {offsets = [8, 0], sizes = [8, 32], strides = [1, 1]} : vector<32x32xf32> to vector<8x32xf32>
    %cst_40 = arith.constant dense<0.000000e+00> : vector<8x32xf32>
    %156 = tpu.matmul %154, %155, %cst_40 {dimension_numbers = #tpu.dot_dimension_numbers<[1], [0], [0], [1], [0, 0, 1, 1], [], []>} : vector<8x8xf32>, vector<8x32xf32>, vector<8x32xf32> -> vector<8x32xf32>
    %157 = arith.addf %136, %156 : vector<8x32xf32>
    %158 = vector.extract_strided_slice %4 {offsets = [8, 16], sizes = [8, 8], strides = [1, 1]} : vector<16x112xf32> to vector<8x8xf32>
    %159 = arith.mulf %158, %103 : vector<8x8xf32>
    %160 = vector.extract_strided_slice %4 {offsets = [8, 80], sizes = [8, 8], strides = [1, 1]} : vector<16x112xf32> to vector<8x8xf32>
    %161 = arith.mulf %160, %104 : vector<8x8xf32>
    %162 = arith.addf %159, %161 : vector<8x8xf32>
    %163 = vector.extract_strided_slice %4 {offsets = [8, 56], sizes = [8, 8], strides = [1, 1]} : vector<16x112xf32> to vector<8x8xf32>
    %cst_41 = arith.constant dense<0.000000e+00> : vector<8x8xf32>
    %164 = tpu.matmul %162, %114, %cst_41 {dimension_numbers = #tpu.dot_dimension_numbers<[1], [1], [0], [0], [0, 0, 1, 0], [], []>} : vector<8x8xf32>, vector<8x8xf32>, vector<8x8xf32> -> vector<8x8xf32>
    %cst_42 = arith.constant dense<0xFF800000> : vector<8xf32>
    %165 = vector.multi_reduction <maximumf>, %164, %cst_42 [1] : vector<8x8xf32> to vector<8xf32>
    %166 = vector.shape_cast %165 : vector<8xf32> to vector<8x1xf32>
    %167 = vector.broadcast %166 : vector<8x1xf32> to vector<8x8xf32>
    %168 = arith.subf %164, %167 : vector<8x8xf32>
    %169 = math.exp %168 : vector<8x8xf32>
    %cst_43 = arith.constant dense<0.000000e+00> : vector<8xf32>
    %170 = vector.multi_reduction <add>, %169, %cst_43 [1] : vector<8x8xf32> to vector<8xf32>
    %171 = vector.shape_cast %170 : vector<8xf32> to vector<8x1xf32>
    %172 = tpu.reciprocal %171 {approx = true} : vector<8x1xf32> -> vector<8x1xf32>
    %173 = vector.broadcast %172 : vector<8x1xf32> to vector<8x8xf32>
    %174 = arith.mulf %169, %173 : vector<8x8xf32>
    %cst_44 = arith.constant dense<0.000000e+00> : vector<8x8xf32>
    %175 = tpu.matmul %174, %163, %cst_44 {dimension_numbers = #tpu.dot_dimension_numbers<[1], [0], [0], [1], [0, 0, 1, 1], [], []>} : vector<8x8xf32>, vector<8x8xf32>, vector<8x8xf32> -> vector<8x8xf32>
    %176 = vector.extract_strided_slice %2 {offsets = [16, 0], sizes = [8, 32], strides = [1, 1]} : vector<32x32xf32> to vector<8x32xf32>
    %cst_45 = arith.constant dense<0.000000e+00> : vector<8x32xf32>
    %177 = tpu.matmul %175, %176, %cst_45 {dimension_numbers = #tpu.dot_dimension_numbers<[1], [0], [0], [1], [0, 0, 1, 1], [], []>} : vector<8x8xf32>, vector<8x32xf32>, vector<8x32xf32> -> vector<8x32xf32>
    %178 = arith.addf %157, %177 : vector<8x32xf32>
    %179 = vector.extract_strided_slice %4 {offsets = [8, 24], sizes = [8, 8], strides = [1, 1]} : vector<16x112xf32> to vector<8x8xf32>
    %180 = arith.mulf %179, %103 : vector<8x8xf32>
    %181 = vector.extract_strided_slice %4 {offsets = [8, 88], sizes = [8, 8], strides = [1, 1]} : vector<16x112xf32> to vector<8x8xf32>
    %182 = arith.mulf %181, %104 : vector<8x8xf32>
    %183 = arith.addf %180, %182 : vector<8x8xf32>
    %184 = vector.extract_strided_slice %4 {offsets = [8, 56], sizes = [8, 8], strides = [1, 1]} : vector<16x112xf32> to vector<8x8xf32>
    %cst_46 = arith.constant dense<0.000000e+00> : vector<8x8xf32>
    %185 = tpu.matmul %183, %114, %cst_46 {dimension_numbers = #tpu.dot_dimension_numbers<[1], [1], [0], [0], [0, 0, 1, 0], [], []>} : vector<8x8xf32>, vector<8x8xf32>, vector<8x8xf32> -> vector<8x8xf32>
    %cst_47 = arith.constant dense<0xFF800000> : vector<8xf32>
    %186 = vector.multi_reduction <maximumf>, %185, %cst_47 [1] : vector<8x8xf32> to vector<8xf32>
    %187 = vector.shape_cast %186 : vector<8xf32> to vector<8x1xf32>
    %188 = vector.broadcast %187 : vector<8x1xf32> to vector<8x8xf32>
    %189 = arith.subf %185, %188 : vector<8x8xf32>
    %190 = math.exp %189 : vector<8x8xf32>
    %cst_48 = arith.constant dense<0.000000e+00> : vector<8xf32>
    %191 = vector.multi_reduction <add>, %190, %cst_48 [1] : vector<8x8xf32> to vector<8xf32>
    %192 = vector.shape_cast %191 : vector<8xf32> to vector<8x1xf32>
    %193 = tpu.reciprocal %192 {approx = true} : vector<8x1xf32> -> vector<8x1xf32>
    %194 = vector.broadcast %193 : vector<8x1xf32> to vector<8x8xf32>
    %195 = arith.mulf %190, %194 : vector<8x8xf32>
    %cst_49 = arith.constant dense<0.000000e+00> : vector<8x8xf32>
    %196 = tpu.matmul %195, %184, %cst_49 {dimension_numbers = #tpu.dot_dimension_numbers<[1], [0], [0], [1], [0, 0, 1, 1], [], []>} : vector<8x8xf32>, vector<8x8xf32>, vector<8x8xf32> -> vector<8x8xf32>
    %197 = vector.extract_strided_slice %2 {offsets = [24, 0], sizes = [8, 32], strides = [1, 1]} : vector<32x32xf32> to vector<8x32xf32>
    %cst_50 = arith.constant dense<0.000000e+00> : vector<8x32xf32>
    %198 = tpu.matmul %196, %197, %cst_50 {dimension_numbers = #tpu.dot_dimension_numbers<[1], [0], [0], [1], [0, 0, 1, 1], [], []>} : vector<8x8xf32>, vector<8x32xf32>, vector<8x32xf32> -> vector<8x32xf32>
    %199 = arith.addf %178, %198 : vector<8x32xf32>
    %c8 = arith.constant 8 : index
    %c0_51 = arith.constant 0 : index
    %200 = vector.load %arg5[%c8, %c0_51] : memref<16x32xf32, #tpu.memory_space<vmem>>, vector<8x32xf32>
    tpu.vector_store %arg5[%c8, %c0_51], %199 {strides = array<i32>} : memref<16x32xf32, #tpu.memory_space<vmem>>, vector<8x32xf32>,
    return
  }
  func.func @transform_0(%arg0: i32) -> (i32, i32) {
    %c0_i32 = arith.constant 0 : i32
    %c0_i32_0 = arith.constant 0 : i32
    %c0_i32_1 = arith.constant 0 : i32
    return %c0_i32, %c0_i32_0 : i32, i32
  }
  func.func @transform_1(%arg0: i32) -> (i32, i32) {
    %c0_i32 = arith.constant 0 : i32
    %c0_i32_0 = arith.constant 0 : i32
    %c0_i32_1 = arith.constant 0 : i32
    return %c0_i32, %c0_i32_0 : i32, i32
  }
  func.func @transform_2(%arg0: i32) -> (i32, i32) {
    %c0_i32 = arith.constant 0 : i32
    %c0_i32_0 = arith.constant 0 : i32
    %c0_i32_1 = arith.constant 0 : i32
    return %c0_i32, %c0_i32_0 : i32, i32
  }
  func.func @transform_3(%arg0: i32) -> (i32, i32) {
    %c0_i32 = arith.constant 0 : i32
    %c0_i32_0 = arith.constant 0 : i32
    %c0_i32_1 = arith.constant 0 : i32
    return %c0_i32, %c0_i32_0 : i32, i32
  }
  func.func @transform_4(%arg0: i32) -> (i32, i32) {
    %c0_i32 = arith.constant 0 : i32
    %c0_i32_0 = arith.constant 0 : i32
    %c0_i32_1 = arith.constant 0 : i32
    return %c0_i32, %c0_i32_0 : i32, i32
  }
}

</mosaic_0001>

<bundles_post_ra>
// kernel: gemma_attention.1
= control target key start
LH: loop header
LB: loop body
LE: loop exit
PB: predicated region body
PF: predicated region fallthrough
CT: control target
= control target key end

     0   :  { %vm30_vm0 = vcmask 261120   ;;  %s2826_s0 = inlined_call_operand.vmem [shape: f32[16,32], index: 0, kind: input, shape index: {}]   ;;  %s2827_s1 = inlined_call_operand.vmem [shape: f32[32,112], index: 1, kind: input, shape index: {}]   ;;  %s2828_s2 = inlined_call_operand.vmem [shape: f32[32,32], index: 2, kind: input, shape index: {}]   ;;  %s2829_s3 = inlined_call_operand.vmem [shape: f32[16,16], index: 3, kind: input, shape index: {}]   ;;  %s2830_s4 = inlined_call_operand.hbm [shape: f32[16,32], index: 4, kind: output, shape index: {}]  }
   0x1   :  { %v20_v0 = vld [vmem:[%s2827_s1] sm:$0xff]  ;;  %v21_v1 = vld [vmem:[%s2827_s1 + $0x8] sm:$0xff]  ;;  %v22_v2 = vld [vmem:[%s2827_s1 + $0x10] sm:$0xff] }
   0x2   :  { %v2392_v3 = vpack.c.bf16 %v21_v1, %v20_v0  ;;  %v23_v4 = vld [vmem:[%s2827_s1 + $0x18] sm:$0xff]  ;;  %v18_v5 = vld [vmem:[%s2826_s0] sm:$0xff] }
   0x3   :  { %v2396_v6 = vpack.c.bf16 %v23_v4, %v22_v2  ;;  %2269 = vmatprep.mubr.msk.f32.mxu0 %vm30_vm0, %v18_v5  ;;  %v2548_v7 = vld [vmem:[%s2829_s3] sm:$0xff] }
   0x4   :  { %9 = vsyncpa [#allocation3], 0  ;;  %2393 = vmatprep.subr.bf16.mxu0 %v2392_v3  ;;  %s2486_s27 = smov 88   ;;  %s2487_s1 = smov 32   ;;  %v19_v8 = vld [vmem:[%s2826_s0 + $0x8] sm:$0xff]  ;;  %v2488_v13 = vmov 0.0  }
   0x5   :  { %117 = vrot.lane.b32.xlu0 %v2548_v7, %s2486_s27  ;;  %2395 = vmatpush3.bf16.msra.mxu0 %v2392_v3  ;;  %s2489_s30 = smov 64   ;;  %s2490_s5 = smov 56   ;;  %vm2491_vm1 = vmmov 0   ;;  %vm152_vm2 = vcmask 64512  }
   0x6   :  { %2397 = vmatprep.subr.bf16.mxu0 %v2396_v6  ;;  %2272 = vmatprep.subr.mxu1 %v2488_v13  ;;  %s2492_s0 = smov 96   ;;  %s2493_s6 = smov 8  }
   0x7   :  { %2274 = vmatprep.mubr.msk.f32.mxu1 %vm2491_vm1, %v2488_v13  ;;  %s2494_s7 = smov 80   ;;  %s2495_s8 = smov 72  }
   0x8   :  { %s2496_s9 = smov 120   ;;  %s2497_s10 = smov 40  }
   0x9   :  { %113 = vrot.lane.b32.xlu0 %v2548_v7, %s2487_s1  ;;  %2399 = vmatpush3.bf16.msra.mxu0 %v2396_v6  ;;  %s2498_s11 = smov 16   ;;  %s2499_s12 = smov 112  }
   0xa   :  { %2292 = vmatprep.subr.mxu0 %v2488_v13  ;;  %s2500_s13 = smov 24   ;;  %s2501_s18 = smov 104  }
   0xc   :  { %2270 = vmatmul.mubr.msk.f32.vlgmr.msra.gmra.mrb[0].mxu0 %vm30_vm0, %v19_v8 }
   0xd   :  { %2294 = vmatprep.mubr.msk.f32.mxu0 %vm2491_vm1, %v2488_v13 }
  0x77   :  { %v118_v10 = vpop.permute.xlu0 %117 }
  0x7b   :  { %v114_v14 = vpop.permute.xlu0 %113 }
  0xdf   :  { %v2558_v9 = vpop.f32.mrb[0].mxu0 }
  0xe0   :  { %v2560_v11 = vpop.f32.mrb[1].mxu0 }
  0xe1   :  { %v120_v12 = vmul.f32 %v118_v10, %v2560_v11  ;;  %v116_v15 = vmul.f32 %v114_v14, %v2560_v11  ;;  %v139_v21 = vmul.f32 %v2560_v11, %v2548_v7  ;;  %v2647_v10 = vld [vmem:[%s2828_s2] sm:$0xff] }
  0xe3   :  { %122 = vrot.lane.b32.xlu1 %v120_v12, %s2489_s30 }
  0xe7   :  { %140 = vrot.lane.b32.xlu1 %v2548_v7, %s2490_s5 }
 0x155   :  { %v123_v16 = vpop.permute.xlu1 %122 }
 0x156   :  { %v125_v17 = vadd.f32 %v123_v16, %v116_v15 }
 0x158   :  { %150 = vrot.lane.b32.xlu0 %v125_v17, %s2492_s0 }
 0x159   :  { %v141_v18 = vpop.permute.xlu1 %140 }
 0x15a   :  { %v143_v19 = vmul.f32 %v141_v18, %v2560_v11 }
 0x15c   :  { %145 = vrot.lane.b32.xlu1 %v143_v19, %s2489_s30  ;;  %320 = vrot.lane.b32.xlu0 %v2548_v7, %s2489_s30 }
 0x160   :  { %316 = vrot.lane.b32.xlu0 %v2548_v7, %s2493_s6 }
 0x1ca   :  { %v151_v20 = vpop.permute.xlu0 %150 }
 0x1cb   :  { %2273 = vmatpush3.xpose.msk.msra.mxu1 %vm152_vm2, %v151_v20 }
 0x1cc   :  { %2277 = vmatprep.subr.mxu1 %v2488_v13 }
 0x1ce   :  { %v146_v22 = vpop.permute.xlu1 %145  ;;  %v321_v23 = vpop.permute.xlu0 %320 }
 0x1cf   :  { %v148_v24 = vadd.f32 %v146_v22, %v139_v21  ;;  %v323_v25 = vmul.f32 %v321_v23, %v2560_v11 }
 0x1d1   :  { %2275 = vmatmul.mubr.msk.f32.vlgmr.msra.gmra.mrb[0].mxu1 %vm152_vm2, %v148_v24  ;;  %325 = vrot.lane.b32.xlu0 %v323_v25, %s2489_s30 }
 0x1d2   :  { %2279 = vmatprep.mubr.msk.f32.mxu1 %vm2491_vm1, %v2488_v13  ;;  %v317_v35 = vpop.permute.xlu0 %316 }
 0x1d3   :  { %v319_v37 = vmul.f32 %v317_v35, %v2560_v11 }
 0x243   :  { %v326_v36 = vpop.permute.xlu0 %325 }
 0x244   :  { %v328_v38 = vadd.f32 %v326_v36, %v319_v37  ;;  %v2687_v37 = vld [vmem:[%s2829_s3 + $0x8] sm:$0xff] }
 0x2a4   :  { %v224_v26 = vpop.f32.mrb[0].mxu1 }
 0x2a5   :  { %v2276_v27 = vpop.f32.mrb[1].mxu1  ;;  %v228_v28 = vsel %vm152_vm2, %v224_v26, -inf }
 0x2a6   :  { %229 = vmax.xlane.f32.xlu1 %v228_v28 }
 0x2b7   :  { %240 = vrot.lane.b32.xlu1 %v2560_v11, %s2494_s7 }
 0x2bb   :  { %130 = vrot.lane.b32.xlu1 %v2548_v7, %s2492_s0 }
 0x2bf   :  { %638 = vrot.lane.b32.xlu1 %v2548_v7, %s2495_s8 }
 0x333   :  { %v230_v29 = vpop.xlane.xlu1 %229 }
 0x334   :  { %v231_v30 = vsub.f32 %v224_v26, %v230_v29 }
 0x336   :  { %v232_v31 = vmul.f32 1.442695, %v231_v30 }
 0x337   :  { %v241_v32 = vpop.permute.xlu1 %240 }
 0x338   :  { %2430 = vpow2.f32 %v232_v31  ;;  %2278 = vmatpush3.msra.mxu1 %v241_v32 }
 0x339   :  { %2282 = vmatprep.subr.mxu1 %v2488_v13 }
 0x33b   :  { %v131_v39 = vpop.permute.xlu1 %130 }
 0x33c   :  { %v133_v40 = vmul.f32 %v131_v39, %v2560_v11 }
 0x33f   :  { %v639_v41 = vpop.permute.xlu1 %638 }
 0x340   :  { %v641_v42 = vmul.f32 %v639_v41, %v2560_v11 }
 0x342   :  { %v2431_v33 = vpop.eup %2430 }
 0x343   :  { %v234_v34 = vsel %vm152_vm2, %v2431_v33, 0.0 }
 0x344   :  { %235 = vadd.xlane.f32.xlu0 %v234_v34 }
 0x35a   :  { %330 = vrot.lane.b32.xlu0 %v328_v38, %s2496_s9 }
 0x35e   :  { %126 = vrot.lane.b32.xlu0 %v2548_v7, %s2497_s10 }
 0x362   :  { %135 = vrot.lane.b32.xlu0 %v133_v40, %s2489_s30 }
 0x366   :  { %634 = vrot.lane.b32.xlu0 %v2548_v7, %s2498_s11 }
 0x36a   :  { %643 = vrot.lane.b32.xlu0 %v641_v42, %s2489_s30 }
 0x3d1   :  { %v236_v43 = vpop.xlane.xlu0 %235 }
 0x3d2   :  { %2432 = vrcp.f32 %v236_v43 }
 0x3d5   :  { %v331_v46 = vpop.permute.xlu0 %330 }
 0x3d9   :  { %v127_v52 = vpop.permute.xlu0 %126 }
 0x3da   :  { %v129_v54 = vmul.f32 %v127_v52, %v2560_v11 }
 0x3dc   :  { %v2433_v44 = vpop.eup %2432 }
 0x3dd   :  { %v238_v45 = vmul.f32 %v2433_v44, %v2431_v33  ;;  %v136_v53 = vpop.permute.xlu0 %135 }
 0x3de   :  { %v138_v55 = vadd.f32 %v136_v53, %v129_v54 }
 0x3df   :  { %2280 = vmatmul.mubr.msk.f32.vlgmr.msra.gmra.mrb[2].mxu1 %vm152_vm2, %v238_v45 }
 0x3e0   :  { %2283 = vmatpush3.xpose.msk.msra.mxu1 %vm152_vm2, %v151_v20  ;;  %2284 = vmatprep.mubr.msk.f32.mxu1 %vm2491_vm1, %v2488_v13 }
 0x3e1   :  { %2287 = vmatprep.subr.mxu1 %v2488_v13  ;;  %v635_v61 = vpop.permute.xlu0 %634 }
 0x3e2   :  { %v637_v63 = vmul.f32 %v635_v61, %v2560_v11 }
 0x3e3   :  { %2285 = vmatmul.mubr.msk.f32.vlgmr.msra.gmra.mrb[4].mxu1 %vm152_vm2, %v331_v46 }
 0x3e4   :  { %2288 = vmatpush3.msra.mxu1 %v241_v32  ;;  %2289 = vmatprep.mubr.msk.f32.mxu1 %vm2491_vm1, %v2488_v13 }
 0x3e5   :  { %2302 = vmatprep.subr.mxu1 %v2488_v13  ;;  %v644_v62 = vpop.permute.xlu0 %643 }
 0x3e6   :  { %v646_v1 = vadd.f32 %v644_v62, %v637_v63  ;;  %v1162_v62 = vmul.f32 %v2558_v9, %v2687_v37 }
 0x4b2   :  { %v312_v47 = vpop.f32.mrb[2].mxu1 }
 0x4b3   :  { %v2281_v48 = vpop.f32.mrb[3].mxu1 }
 0x4b6   :  { %v400_v49 = vpop.f32.mrb[4].mxu1 }
 0x4b7   :  { %v2286_v50 = vpop.f32.mrb[5].mxu1  ;;  %v404_v51 = vsel %vm152_vm2, %v400_v49, -inf }
 0x4b8   :  { %405 = vmax.xlane.f32.xlu1 %v404_v51 }
 0x4c9   :  { %651 = vrot.lane.b32.xlu1 %v138_v55, %s2486_s27 }
 0x4cd   :  { %892 = vrot.lane.b32.xlu1 %v2548_v7, %s2494_s7 }
 0x545   :  { %v406_v56 = vpop.xlane.xlu1 %405 }
 0x546   :  { %v407_v57 = vsub.f32 %v400_v49, %v406_v56 }
 0x548   :  { %v408_v58 = vmul.f32 1.442695, %v407_v57 }
 0x549   :  { %v652_v0 = vpop.permute.xlu1 %651 }
 0x54a   :  { %2434 = vpow2.f32 %v408_v58 }
 0x54d   :  { %v893_v2 = vpop.permute.xlu1 %892 }
 0x54e   :  { %v895_v3 = vmul.f32 %v893_v2, %v2560_v11 }
 0x554   :  { %v2435_v59 = vpop.eup %2434 }
 0x555   :  { %v410_v60 = vsel %vm152_vm2, %v2435_v59, 0.0 }
 0x556   :  { %411 = vadd.xlane.f32.xlu0 %v410_v60  ;;  %v2713_v60 = vld [vmem:[%s2828_s2 + $0x18] sm:$0xff] }
 0x56c   :  { %648 = vrot.lane.b32.xlu0 %v646_v1, %s2499_s12 }
 0x570   :  { %888 = vrot.lane.b32.xlu0 %v2548_v7, %s2500_s13  ;;  %v2640_v7 = vld [vmem:[%s2828_s2 + $0x8] sm:$0xff] }
 0x571   :  { %2293 = vmatpush3.msra.mxu0 %v2640_v7 }
 0x572   :  { %2297 = vmatprep.subr.mxu0 %v2488_v13 }
 0x574   :  { %897 = vrot.lane.b32.xlu0 %v895_v3, %s2489_s30 }
 0x5e3   :  { %v412_v4 = vpop.xlane.xlu0 %411 }
 0x5e4   :  { %2436 = vrcp.f32 %v412_v4 }
 0x5e7   :  { %v649_v8 = vpop.permute.xlu0 %648 }
 0x5eb   :  { %v889_v18 = vpop.permute.xlu0 %888 }
 0x5ec   :  { %v891_v20 = vmul.f32 %v889_v18, %v2560_v11 }
 0x5ee   :  { %v2437_v5 = vpop.eup %2436 }
 0x5ef   :  { %v414_v6 = vmul.f32 %v2437_v5, %v2435_v59  ;;  %v898_v19 = vpop.permute.xlu0 %897 }
 0x5f0   :  { %v900_v21 = vadd.f32 %v898_v19, %v891_v20 }
 0x5f1   :  { %2290 = vmatmul.mubr.msk.f32.vlgmr.msra.gmra.mrb[6].mxu1 %vm152_vm2, %v414_v6 }
 0x5f2   :  { %2303 = vmatpush3.xpose.msk.msra.mxu1 %vm152_vm2, %v652_v0  ;;  %2304 = vmatprep.mubr.msk.f32.mxu1 %vm2491_vm1, %v2488_v13 }
 0x5f3   :  { %2307 = vmatprep.subr.mxu1 %v2488_v13 }
 0x5f5   :  { %2305 = vmatmul.mubr.msk.f32.vlgmr.msra.gmra.mrb[8].mxu1 %vm152_vm2, %v649_v8 }
 0x5f6   :  { %2309 = vmatprep.mubr.msk.f32.mxu1 %vm2491_vm1, %v2488_v13 }
 0x6c4   :  { %v484_v12 = vpop.f32.mrb[6].mxu1 }
 0x6c5   :  { %v2291_v14 = vpop.f32.mrb[7].mxu1  ;;  %2295 = vmatmul.mubr.msk.f32.vlgmr.msra.gmra.mrb[2].mxu0 %vm152_vm2, %v484_v12 }
 0x6c6   :  { %2298 = vmatpush3.msra.mxu0 %v2647_v10  ;;  %2299 = vmatprep.mubr.msk.f32.mxu0 %vm2491_vm1, %v2488_v13 }
 0x6c7   :  { %2312 = vmatprep.subr.mxu0 %v2488_v13 }
 0x6c8   :  { %v723_v15 = vpop.f32.mrb[8].mxu1 }
 0x6c9   :  { %v2306_v16 = vpop.f32.mrb[9].mxu1  ;;  %v727_v17 = vsel %vm152_vm2, %v723_v15, -inf }
 0x6ca   :  { %728 = vmax.xlane.f32.xlu1 %v727_v17 }
 0x6cd   :  { %2300 = vmatmul.mubr.msk.f32.vlgmr.msra.gmra.mrb[2].mxu0 %vm152_vm2, %v312_v47 }
 0x6ce   :  { %2314 = vmatprep.mubr.msk.f32.mxu0 %vm2491_vm1, %v2488_v13 }
 0x6db   :  { %738 = vrot.lane.b32.xlu1 %v2560_v11, %s2495_s8  ;;  %v2667_v11 = vld [vmem:[%s2828_s2 + $0x10] sm:$0xff]  ;;  %s2502_s2 = smov [#allocation2]  }
 0x6dc   :  { %2313 = vmatpush3.msra.mxu0 %v2667_v11  ;;  %s2162_s24 = sshll.u32 %s2502_s2, 4  ;;  %s2163_s24 = int_to_ptr.vmem [resolvable:$true] %s2162_s24 }
 0x6dd   :  { %2322 = vmatprep.subr.mxu0 %v2488_v13  ;;  %s2462_s25 = scalar_lea.vmem %s2163_s24, 256  ;;  %p2467_p1 = scmp.lt.s32.totalorder %s2163_s24, %s2163_s24 }
 0x6de   :  { %p2463_p0 = scmp.ne.s32.totalorder %s2163_s24, %s2462_s25  ;;  %p2468_p2 = scmp.lt.s32.totalorder %s2462_s25, %s2462_s25 }
 0x6df   :  { %902 = vrot.lane.b32.xlu1 %v900_v21, %s2501_s18 }
 0x6e0   :  { %p2469_p3 = por %p2468_p2, %p2467_p1 }
 0x6e2   :  { %p2470_p4 = pnand %p2469_p3, %p2463_p0 }
 0x757   :  { %v729_v22 = vpop.xlane.xlu1 %728 }
 0x758   :  { %v730_v23 = vsub.f32 %v723_v15, %v729_v22 }
 0x75a   :  { %v731_v24 = vmul.f32 1.442695, %v730_v23 }
 0x75b   :  { %v739_v25 = vpop.permute.xlu1 %738 }
 0x75c   :  { %2438 = vpow2.f32 %v731_v24  ;;  %2308 = vmatpush3.msra.mxu1 %v739_v25 }
 0x75d   :  { %2317 = vmatprep.subr.mxu1 %v2488_v13 }
 0x75f   :  { %v903_v31 = vpop.permute.xlu1 %902 }
 0x766   :  { %v2439_v26 = vpop.eup %2438 }
 0x767   :  { %v733_v27 = vsel %vm152_vm2, %v2439_v26, 0.0 }
 0x768   :  { %734 = vadd.xlane.f32.xlu0 %v733_v27 }
 0x7f5   :  { %v735_v28 = vpop.xlane.xlu0 %734 }
 0x7f6   :  { %2440 = vrcp.f32 %v735_v28 }
 0x800   :  { %v2441_v29 = vpop.eup %2440 }
 0x801   :  { %v737_v30 = vmul.f32 %v2441_v29, %v2439_v26 }
 0x803   :  { %2310 = vmatmul.mubr.msk.f32.vlgmr.msra.gmra.mrb[10].mxu1 %vm152_vm2, %v737_v30 }
 0x804   :  { %2318 = vmatpush3.xpose.msk.msra.mxu1 %vm152_vm2, %v652_v0  ;;  %2319 = vmatprep.mubr.msk.f32.mxu1 %vm2491_vm1, %v2488_v13 }
 0x805   :  { %2332 = vmatprep.subr.mxu1 %v2488_v13 }
 0x807   :  { %2320 = vmatmul.mubr.msk.f32.vlgmr.msra.gmra.mrb[12].mxu1 %vm152_vm2, %v903_v31 }
 0x808   :  { %2334 = vmatprep.mubr.msk.f32.mxu1 %vm2491_vm1, %v2488_v13 }
 0x8d6   :  { %v810_v32 = vpop.f32.mrb[10].mxu1 }
 0x8d7   :  { %v2311_v33 = vpop.f32.mrb[11].mxu1  ;;  %2315 = vmatmul.mubr.msk.f32.vlgmr.msra.gmra.mrb[2].mxu0 %vm152_vm2, %v810_v32 }
 0x8d8   :  { %2323 = vmatpush3.msra.mxu0 %v739_v25  ;;  %2324 = vmatprep.mubr.msk.f32.mxu0 %vm2491_vm1, %v2488_v13 }
 0x8d9   :  { %2327 = vmatprep.subr.mxu0 %v2488_v13 }
 0x8da   :  { %v972_v34 = vpop.f32.mrb[12].mxu1 }
 0x8db   :  { %v2321_v35 = vpop.f32.mrb[13].mxu1  ;;  %v976_v36 = vsel %vm152_vm2, %v972_v34, -inf }
 0x8dc   :  { %977 = vmax.xlane.f32.xlu0 %v976_v36 }
 0x8f2   :  { %1140 = vrot.lane.b32.xlu0 %v2687_v37, %s2486_s27 }
 0x8f6   :  { %1342 = vrot.lane.b32.xlu0 %v2687_v37, %s2489_s30 }
 0x8fa   :  { %1136 = vrot.lane.b32.xlu0 %v2687_v37, %s2487_s1 }
 0x969   :  { %v978_v38 = vpop.xlane.xlu0 %977 }
 0x96a   :  { %v979_v39 = vsub.f32 %v972_v34, %v978_v38 }
 0x96c   :  { %v980_v40 = vmul.f32 1.442695, %v979_v39 }
 0x96d   :  { %v1141_v41 = vpop.permute.xlu0 %1140 }
 0x96e   :  { %2442 = vpow2.f32 %v980_v40  ;;  %v1143_v42 = vmul.f32 %v2558_v9, %v1141_v41 }
 0x970   :  { %1145 = vrot.lane.b32.xlu0 %v1143_v42, %s2489_s30 }
 0x971   :  { %v1343_v43 = vpop.permute.xlu0 %1342 }
 0x972   :  { %v1345_v44 = vmul.f32 %v2558_v9, %v1343_v43 }
 0x974   :  { %1163 = vrot.lane.b32.xlu0 %v2687_v37, %s2490_s5 }
 0x975   :  { %v1137_v47 = vpop.permute.xlu0 %1136 }
 0x976   :  { %v1139_v48 = vmul.f32 %v2558_v9, %v1137_v47 }
 0x978   :  { %v2443_v45 = vpop.eup %2442  ;;  %1347 = vrot.lane.b32.xlu0 %v1345_v44, %s2489_s30 }
 0x979   :  { %v982_v46 = vsel %vm152_vm2, %v2443_v45, 0.0 }
 0x97a   :  { %983 = vadd.xlane.f32.xlu1 %v982_v46 }
 0x98b   :  { %1338 = vrot.lane.b32.xlu1 %v2687_v37, %s2493_s6 }
 0x9e2   :  { %v1146_v49 = vpop.permute.xlu0 %1145 }
 0x9e3   :  { %v1148_v50 = vadd.f32 %v1146_v49, %v1139_v48 }
 0x9e5   :  { %1173 = vrot.lane.b32.xlu0 %v1148_v50, %s2492_s0 }
 0x9e6   :  { %v1164_v51 = vpop.permute.xlu0 %1163 }
 0x9e7   :  { %v1166_v52 = vmul.f32 %v2558_v9, %v1164_v51 }
 0x9e9   :  { %1168 = vrot.lane.b32.xlu0 %v1166_v52, %s2489_s30 }
 0x9ea   :  { %v1348_v56 = vpop.permute.xlu0 %1347 }
 0xa07   :  { %v984_v53 = vpop.xlane.xlu1 %983 }
 0xa08   :  { %2444 = vrcp.f32 %v984_v53 }
 0xa0b   :  { %v1339_v54 = vpop.permute.xlu1 %1338 }
 0xa0c   :  { %v1341_v55 = vmul.f32 %v2558_v9, %v1339_v54 }
 0xa0e   :  { %v1350_v57 = vadd.f32 %v1348_v56, %v1341_v55 }
 0xa10   :  { %1352 = vrot.lane.b32.xlu0 %v1350_v57, %s2496_s9 }
 0xa12   :  { %v2445_v58 = vpop.eup %2444 }
 0xa13   :  { %v986_v59 = vmul.f32 %v2445_v58, %v2443_v45 }
 0xa14   :  { %1153 = vrot.lane.b32.xlu0 %v2687_v37, %s2492_s0 }
 0xa15   :  { %2325 = vmatmul.mubr.msk.f32.vlgmr.msra.gmra.mrb[4].mxu0 %vm152_vm2, %v986_v59 }
 0xa16   :  { %2328 = vmatpush3.msra.mxu0 %v2713_v60  ;;  %2329 = vmatprep.mubr.msk.f32.mxu0 %vm2491_vm1, %v2488_v13 }
 0xa17   :  { %2342 = vmatprep.subr.mxu0 %v2488_v13 }
 0xa18   :  { %1660 = vrot.lane.b32.xlu0 %v2687_v37, %s2495_s8 }
 0xa57   :  { %v1174_v61 = vpop.permute.xlu0 %1173 }
 0xa58   :  { %2333 = vmatpush3.xpose.msk.msra.mxu1 %vm152_vm2, %v1174_v61 }
 0xa59   :  { %2337 = vmatprep.subr.mxu1 %v2488_v13 }
 0xa5b   :  { %v1169_v63 = vpop.permute.xlu0 %1168 }
 0xa5c   :  { %v1171_v0 = vadd.f32 %v1169_v63, %v1162_v62 }
 0xa5e   :  { %2335 = vmatmul.mubr.msk.f32.vlgmr.msra.gmra.mrb[14].mxu1 %vm152_vm2, %v1171_v0 }
 0xa5f   :  { %2339 = vmatprep.mubr.msk.f32.mxu1 %vm2491_vm1, %v2488_v13 }
 0xa82   :  { %v1353_v1 = vpop.permute.xlu0 %1352 }
 0xa86   :  { %v1154_v2 = vpop.permute.xlu0 %1153 }
 0xa87   :  { %v1156_v3 = vmul.f32 %v2558_v9, %v1154_v2 }
 0xa8a   :  { %v1661_v14 = vpop.permute.xlu0 %1660 }
 0xa8b   :  { %v1663_v15 = vmul.f32 %v2558_v9, %v1661_v14 }
 0xae8   :  { %v1056_v4 = vpop.f32.mrb[4].mxu0 }
 0xae9   :  { %v2326_v5 = vpop.f32.mrb[5].mxu0  ;;  %2330 = vmatmul.mubr.msk.f32.vlgmr.msra.gmra.mrb[2].mxu0 %vm152_vm2, %v1056_v4 }
 0xaea   :  { %2343 = vmatpush3.xpose.msk.msra.mxu0 %vm152_vm2, %v1174_v61  ;;  %2344 = vmatprep.mubr.msk.f32.mxu0 %vm2491_vm1, %v2488_v13 }
 0xaeb   :  { %2352 = vmatprep.subr.mxu0 %v2488_v13 }
 0xaed   :  { %2345 = vmatmul.mubr.msk.f32.vlgmr.msra.gmra.mrb[6].mxu0 %vm152_vm2, %v1353_v1 }
 0xaee   :  { %2353 = vmatpush3.msra.mxu0 %v2640_v7  ;;  %2354 = vmatprep.mubr.msk.f32.mxu0 %vm2491_vm1, %v2488_v13 }
 0xaef   :  { %2357 = vmatprep.subr.mxu0 %v2488_v13 }
 0xb31   :  { %v1246_v6 = vpop.f32.mrb[14].mxu1 }
 0xb32   :  { %v2336_v8 = vpop.f32.mrb[15].mxu1  ;;  %v1250_v12 = vsel %vm152_vm2, %v1246_v6, -inf }
 0xb33   :  { %1251 = vmax.xlane.f32.xlu1 %v1250_v12 }
 0xb44   :  { %1149 = vrot.lane.b32.xlu1 %v2687_v37, %s2497_s10 }
 0xb48   :  { %1656 = vrot.lane.b32.xlu1 %v2687_v37, %s2498_s11 }
 0xb4c   :  { %1665 = vrot.lane.b32.xlu1 %v1663_v15, %s2489_s30 }
 0xbbc   :  { %v1129_v7 = vpop.f32.mrb[2].mxu0 }
 0xbbd   :  { %1134 = vst.msk [vmem:[#allocation2] sm:$0xff] %vm30_vm0, %v1129_v7  ;;  %v2331_v16 = vpop.f32.mrb[3].mxu0 }
 0xbc0   :  { %v1422_v17 = vpop.f32.mrb[6].mxu0  ;;  %v1252_v18 = vpop.xlane.xlu1 %1251 }
 0xbc1   :  { %v1253_v19 = vsub.f32 %v1246_v6, %v1252_v18  ;;  %v2346_v20 = vpop.f32.mrb[7].mxu0  ;;  %v1426_v21 = vsel %vm152_vm2, %v1422_v17, -inf }
 0xbc2   :  { %1427 = vmax.xlane.f32.xlu0 %v1426_v21 }
 0xbc3   :  { %v1254_v22 = vmul.f32 1.442695, %v1253_v19 }
 0xbc4   :  { %v1150_v25 = vpop.permute.xlu1 %1149 }
 0xbc5   :  { %2446 = vpow2.f32 %v1254_v22  ;;  %v1152_v29 = vmul.f32 %v2558_v9, %v1150_v25 }
 0xbc8   :  { %v1657_v26 = vpop.permute.xlu1 %1656 }
 0xbc9   :  { %v1659_v34 = vmul.f32 %v2558_v9, %v1657_v26 }
 0xbcc   :  { %v1666_v33 = vpop.permute.xlu1 %1665 }
 0xbcd   :  { %v1668_v35 = vadd.f32 %v1666_v33, %v1659_v34 }
 0xbcf   :  { %v2447_v23 = vpop.eup %2446 }
 0xbd0   :  { %v1256_v24 = vsel %vm152_vm2, %v2447_v23, 0.0 }
 0xbd1   :  { %1257 = vadd.xlane.f32.xlu1 %v1256_v24 }
 0xbd8   :  { %1158 = vrot.lane.b32.xlu0 %v1156_v3, %s2489_s30 }
 0xc4f   :  { %v1428_v27 = vpop.xlane.xlu0 %1427 }
 0xc50   :  { %v1429_v28 = vsub.f32 %v1422_v17, %v1428_v27 }
 0xc52   :  { %v1430_v30 = vmul.f32 1.442695, %v1429_v28 }
 0xc53   :  { %v1159_v31 = vpop.permute.xlu0 %1158 }
 0xc54   :  { %2448 = vpow2.f32 %v1430_v30  ;;  %v1161_v32 = vadd.f32 %v1159_v31, %v1152_v29 }
 0xc56   :  { %1673 = vrot.lane.b32.xlu1 %v1161_v32, %s2486_s27 }
 0xc5a   :  { %1670 = vrot.lane.b32.xlu1 %v1668_v35, %s2499_s12 }
 0xc5e   :  { %v2449_v36 = vpop.eup %2448  ;;  %v1258_v39 = vpop.xlane.xlu1 %1257 }
 0xc5f   :  { %v1432_v38 = vsel %vm152_vm2, %v2449_v36, 0.0  ;;  %2450 = vrcp.f32 %v1258_v39 }
 0xc60   :  { %1433 = vadd.xlane.f32.xlu0 %v1432_v38 }
 0xc69   :  { %v2451_v41 = vpop.eup %2450 }
 0xc6a   :  { %v1260_v42 = vmul.f32 %v2451_v41, %v2447_v23 }
 0xc76   :  { %1262 = vrot.lane.b32.xlu0 %v2558_v9, %s2494_s7 }
 0xc7a   :  { %1914 = vrot.lane.b32.xlu0 %v2687_v37, %s2494_s7 }
 0xc7e   :  { %1910 = vrot.lane.b32.xlu0 %v2687_v37, %s2500_s13 }
 0xcc8   :  { %v1674_v46 = vpop.permute.xlu1 %1673 }
 0xccc   :  { %v1671_v48 = vpop.permute.xlu1 %1670 }
 0xced   :  { %v1434_v40 = vpop.xlane.xlu0 %1433 }
 0xcee   :  { %2452 = vrcp.f32 %v1434_v40 }
 0xcf1   :  { %v1263_v43 = vpop.permute.xlu0 %1262 }
 0xcf2   :  { %2338 = vmatpush3.msra.mxu1 %v1263_v43 }
 0xcf3   :  { %2340 = vmatmul.mubr.msk.f32.vlgmr.msra.gmra.mrb[16].mxu1 %vm152_vm2, %v1260_v42  ;;  %2347 = vmatprep.subr.mxu1 %v2488_v13 }
 0xcf4   :  { %2348 = vmatpush3.msra.mxu1 %v1263_v43  ;;  %2349 = vmatprep.mubr.msk.f32.mxu1 %vm2491_vm1, %v2488_v13 }
 0xcf5   :  { %v1915_v44 = vpop.permute.xlu0 %1914  ;;  %2362 = vmatprep.subr.mxu1 %v2488_v13 }
 0xcf6   :  { %v1917_v37 = vmul.f32 %v2558_v9, %v1915_v44 }
 0xcf8   :  { %v2453_v45 = vpop.eup %2452  ;;  %1919 = vrot.lane.b32.xlu0 %v1917_v37, %s2489_s30 }
 0xcf9   :  { %v1436_v47 = vmul.f32 %v2453_v45, %v2449_v36 }
 0xcfb   :  { %2350 = vmatmul.mubr.msk.f32.vlgmr.msra.gmra.mrb[18].mxu1 %vm152_vm2, %v1436_v47 }
 0xcfc   :  { %2363 = vmatpush3.xpose.msk.msra.mxu1 %vm152_vm2, %v1674_v46  ;;  %2364 = vmatprep.mubr.msk.f32.mxu1 %vm2491_vm1, %v2488_v13 }
 0xcfd   :  { %2367 = vmatprep.subr.mxu1 %v2488_v13 }
 0xcff   :  { %2365 = vmatmul.mubr.msk.f32.vlgmr.msra.gmra.mrb[20].mxu1 %vm152_vm2, %v1671_v48 }
 0xd00   :  { %2369 = vmatprep.mubr.msk.f32.mxu1 %vm2491_vm1, %v2488_v13 }
 0xdc6   :  { %v1334_v49 = vpop.f32.mrb[16].mxu1 }
 0xdc7   :  { %v2341_v50 = vpop.f32.mrb[17].mxu1 }
 0xdce   :  { %v1506_v51 = vpop.f32.mrb[18].mxu1 }
 0xdcf   :  { %v2351_v52 = vpop.f32.mrb[19].mxu1  ;;  %2355 = vmatmul.mubr.msk.f32.vlgmr.msra.gmra.mrb[8].mxu0 %vm152_vm2, %v1506_v51 }
 0xdd0   :  { %2358 = vmatpush3.msra.mxu0 %v2647_v10  ;;  %2359 = vmatprep.mubr.msk.f32.mxu0 %vm2491_vm1, %v2488_v13 }
 0xdd1   :  { %2372 = vmatprep.subr.mxu0 %v2488_v13 }
 0xdd2   :  { %v1745_v53 = vpop.f32.mrb[20].mxu1 }
 0xdd3   :  { %v2366_v54 = vpop.f32.mrb[21].mxu1  ;;  %v1749_v55 = vsel %vm152_vm2, %v1745_v53, -inf }
 0xdd4   :  { %1750 = vmax.xlane.f32.xlu1 %v1749_v55 }
 0xdd7   :  { %2360 = vmatmul.mubr.msk.f32.vlgmr.msra.gmra.mrb[8].mxu0 %vm152_vm2, %v1334_v49 }
 0xdd8   :  { %2373 = vmatpush3.msra.mxu0 %v2667_v11  ;;  %2374 = vmatprep.mubr.msk.f32.mxu0 %vm2491_vm1, %v2488_v13  ;;  %v1911_v11 = vpop.permute.xlu0 %1910 }
 0xdd9   :  { %2382 = vmatprep.subr.mxu0 %v2488_v13  ;;  %v1913_v63 = vmul.f32 %v2558_v9, %v1911_v11 }
 0xddc   :  { %v1920_v62 = vpop.permute.xlu0 %1919 }
 0xddd   :  { %v1922_v0 = vadd.f32 %v1920_v62, %v1913_v63 }
 0xde5   :  { %1760 = vrot.lane.b32.xlu1 %v2558_v9, %s2495_s8 }
 0xe61   :  { %v1751_v10 = vpop.xlane.xlu1 %1750 }
 0xe62   :  { %v1752_v56 = vsub.f32 %v1745_v53, %v1751_v10 }
 0xe64   :  { %v1753_v57 = vmul.f32 1.442695, %v1752_v56 }
 0xe65   :  { %v1761_v58 = vpop.permute.xlu1 %1760 }
 0xe66   :  { %2454 = vpow2.f32 %v1753_v57  ;;  %2368 = vmatpush3.msra.mxu1 %v1761_v58 }
 0xe67   :  { %2377 = vmatprep.subr.mxu1 %v2488_v13 }
 0xe70   :  { %v2455_v59 = vpop.eup %2454 }
 0xe71   :  { %v1755_v61 = vsel %vm152_vm2, %v2455_v59, 0.0 }
 0xe72   :  { %1756 = vadd.xlane.f32.xlu0 %v1755_v61 }
 0xe88   :  { %1924 = vrot.lane.b32.xlu0 %v1922_v0, %s2501_s18 }
 0xeff   :  { %v1757_v1 = vpop.xlane.xlu0 %1756 }
 0xf00   :  { %2456 = vrcp.f32 %v1757_v1 }
 0xf03   :  { %v1925_v4 = vpop.permute.xlu0 %1924 }
 0xf0a   :  { %v2457_v2 = vpop.eup %2456 }
 0xf0b   :  { %v1759_v3 = vmul.f32 %v2457_v2, %v2455_v59 }
 0xf0d   :  { %2370 = vmatmul.mubr.msk.f32.vlgmr.msra.gmra.mrb[22].mxu1 %vm152_vm2, %v1759_v3 }
 0xf0e   :  { %2378 = vmatpush3.xpose.msk.msra.mxu1 %vm152_vm2, %v1674_v46  ;;  %2379 = vmatprep.mubr.msk.f32.mxu1 %vm2491_vm1, %v2488_v13 }
 0xf11   :  { %2380 = vmatmul.mubr.msk.f32.vlgmr.msra.gmra.mrb[24].mxu1 %vm152_vm2, %v1925_v4 }
 0xfe0   :  { %v1832_v5 = vpop.f32.mrb[22].mxu1 }
 0xfe1   :  { %v2371_v6 = vpop.f32.mrb[23].mxu1  ;;  %2375 = vmatmul.mubr.msk.f32.vlgmr.msra.gmra.mrb[8].mxu0 %vm152_vm2, %v1832_v5 }
 0xfe2   :  { %2383 = vmatpush3.msra.mxu0 %v1761_v58  ;;  %2384 = vmatprep.mubr.msk.f32.mxu0 %vm2491_vm1, %v2488_v13 }
 0xfe3   :  { %2387 = vmatprep.subr.mxu0 %v2488_v13 }
 0xfe4   :  { %v1994_v9 = vpop.f32.mrb[24].mxu1 }
 0xfe5   :  { %v2381_v8 = vpop.f32.mrb[25].mxu1  ;;  %v1998_v12 = vsel %vm152_vm2, %v1994_v9, -inf }
 0xfe6   :  { %1999 = vmax.xlane.f32.xlu1 %v1998_v12 }
0x1073   :  { %v2000_v14 = vpop.xlane.xlu1 %1999 }
0x1074   :  { %v2001_v15 = vsub.f32 %v1994_v9, %v2000_v14 }
0x1076   :  { %v2002_v7 = vmul.f32 1.442695, %v2001_v15 }
0x1078   :  { %2458 = vpow2.f32 %v2002_v7 }
0x1082   :  { %v2459_v16 = vpop.eup %2458 }
0x1083   :  { %v2004_v17 = vsel %vm152_vm2, %v2459_v16, 0.0 }
0x1084   :  { %2005 = vadd.xlane.f32.xlu0 %v2004_v17 }
0x1111   :  { %v2006_v18 = vpop.xlane.xlu0 %2005 }
0x1112   :  { %2460 = vrcp.f32 %v2006_v18 }
0x111c   :  { %v2461_v19 = vpop.eup %2460 }
0x111d   :  { %v2008_v20 = vmul.f32 %v2461_v19, %v2459_v16 }
0x111f   :  { %2385 = vmatmul.mubr.msk.f32.vlgmr.msra.gmra.mrb[10].mxu0 %vm152_vm2, %v2008_v20 }
0x1120   :  { %2388 = vmatpush3.msra.mxu0 %v2713_v60  ;;  %2389 = vmatprep.mubr.msk.f32.mxu0 %vm2491_vm1, %v2488_v13 }
0x11f2   :  { %v2078_v21 = vpop.f32.mrb[10].mxu0 }
0x11f3   :  { %v2386_v22 = vpop.f32.mrb[11].mxu0  ;;  %2390 = vmatmul.mubr.msk.f32.vlgmr.msra.gmra.mrb[8].mxu0 %vm152_vm2, %v2078_v21 }
0x12c6   :  { %v2151_v23 = vpop.f32.mrb[8].mxu0 }
0x12c7   :  { %2156 = vst.msk [vmem:[#allocation2 + $0x8] sm:$0xff] %vm30_vm0, %v2151_v23  ;;  %v2391_v24 = vpop.f32.mrb[9].mxu0 }
0x12c8   :  { %2473 = shalt.err (!%p2470_p4)
}
0x12c9   :  { %s2474_s1 = scalar_lea.hbm %s2830_s4, 256 }
0x12ca   :  { %p2475_p5 = scmp.ne.s32.totalorder %s2830_s4, %s2474_s1  ;;  %p2478_p6 = scmp.lt.u32.totalorder %s2474_s1, %s2830_s4 }
0x12cc   :  { %p2480_p7 = pnand %p2478_p6, %p2475_p5 }
0x12ce   :  { %2483 = shalt.err (!%p2480_p7)
}
0x12cf   :  { %s2503_s0 = smov 128  }
0x12d0   :  { %2168 = dma.vmem_to_hbm [thread:$0]  %s2163_s24, 256, %s2830_s4, [#allocation3], %s2503_s0, %s2503_s0, %s2493_s6  }
0x12d1   :  { %2484 = dma.done.wait [#allocation3], 256  }
0x12d2   :  { %2485 = vsyncadd [#allocation3], 4294967040 }
0x12d3   :  { %2172 = vsyncpa [#allocation3], 1 }

</bundles_post_ra>
